<compile_context>
chip_gen: v5e
topology: v5e:2x2
jax: 0.10.0
libtpu: 0.0.40
codegen_flags: <defaults>
</compile_context>

<pallas_src>
import functools

import jax
import jax.numpy as jnp
import numpy as np
from jax import lax
from jax.experimental import pallas as pl
from jax.experimental.pallas import tpu as pltpu


def _tebn2d_kernel(x_ref, wb_ref, o_ref, *, eps, inv_n):
    # x_ref: (t_tile, B, c_tile, S) native dtype ; wb_ref: (t_tile, c_tile, 2) f32
    x = x_ref[...].astype(jnp.float32)

    # One-pass per-(t, channel) minibatch statistics over the full (B, S) slab.
    s1 = jnp.sum(x, axis=(1, 3), keepdims=True)                    # (tt,1,ct,1)
    s2 = jnp.sum(x * x, axis=(1, 3), keepdims=True)                # (tt,1,ct,1)
    mean = s1 * inv_n
    var = jnp.maximum(s2 * inv_n - mean * mean, 0.0)               # clamp for safety
    rstd = lax.rsqrt(var + eps)                                    # EUP (free slot)

    wb = wb_ref[...]                                               # (tt,ct,2) f32
    w = jnp.expand_dims(wb[:, :, 0:1], 1)                          # scale[t]*weight -> (tt,1,ct,1)
    b = jnp.expand_dims(wb[:, :, 1:2], 1)                          # scale[t]*bias   -> (tt,1,ct,1)
    g = rstd * w
    # ((x - mean)*rstd*weight + bias) * scale[t]  ==  x*g + (b - mean*g)
    o_ref[...] = (x * g + (b - mean * g)).astype(o_ref.dtype)


def _vmem_capacity_bytes():
    """Physical per-core VMEM (fallback: 64 MiB, the smallest = v7x)."""
    try:
        info = pltpu.get_tpu_info()
        for name in ("vmem_capacity_bytes", "vmem_size_bytes", "vmem_bytes"):
            cap = getattr(info, name, None)
            if cap:
                return int(cap)
    except Exception:
        pass
    return 64 << 20


def _tile_plan(T, B, C, S, itemsize):
    """Pick (t_tile, c_tile, vmem_limit_bytes) from the actual VMEM capacity.

    Block-byte target = (3/8 of physical VMEM) / live-buffer multiplier, where the
    multiplier counts 2 input + 2 output double-buffers (native dtype) plus ~3
    block-sized f32 temporaries inside the kernel.
    """
    cap = _vmem_capacity_bytes()
    live_budget = (cap * 3) // 8                     # ~48 MiB on v5e/v6e, ~24 MiB on v7x
    live_mult = 4 + 3 * max(1, 4 // itemsize)        # 7 for f32, 10 for bf16
    target = max(live_budget // live_mult, 1 << 20)

    sublane_mult = {4: 8, 2: 16, 1: 32}.get(itemsize, 8)
    per_c = B * S * itemsize                         # bytes per (timestep, channel)

    # c_tile: largest divisor of C that is sublane-legal and fits the target.
    if C % sublane_mult != 0:
        c_tile = C                                   # only legal choice (full-dim escape)
    else:
        cands = [d for d in range(sublane_mult, C + 1, sublane_mult) if C % d == 0]
        fitting = [d for d in cands if per_c * d <= target]
        c_tile = max(fitting) if fitting else min(cands)
    n_cblk = C // c_tile

    # t_tile: grow toward the target; keep total parallel blocks >= 2 when possible.
    t_tile = 1
    for d in range(1, T + 1):
        if T % d:
            continue
        if d > 1 and per_c * c_tile * d > target:
            continue
        if d > 1 and (T // d) * n_cblk < 2:
            continue
        t_tile = d

    block_bytes = per_c * c_tile * t_tile
    vmem_limit = block_bytes * (live_mult + 1) + (4 << 20)
    vmem_limit = int(min(cap * 3 // 4, max(32 << 20, vmem_limit)))
    return t_tile, c_tile, vmem_limit


def tebn2d_forward(x, weight, bias, scale, *, eps=1e-5):
    """x: (T, B, C, H, W) float -> (T, B, C, H, W) same dtype (training-mode TEBN2d)."""
    T, B, C, H, W = x.shape
    S = H * W
    x4 = x.reshape(T, B, C, S)                       # free reshape; native dtype, no host cast

    # Fold the per-timestep scale into the per-channel affine (tiny (T, C, 2) table).
    w_ts = scale.astype(jnp.float32)[:, None] * weight.astype(jnp.float32)[None, :]
    b_ts = scale.astype(jnp.float32)[:, None] * bias.astype(jnp.float32)[None, :]
    wb = jnp.stack([w_ts, b_ts], axis=-1)            # (T, C, 2) f32

    itemsize = jnp.dtype(x.dtype).itemsize
    t_tile, c_tile, vmem_limit = _tile_plan(T, B, C, S, itemsize)
    grid = (T // t_tile, C // c_tile)

    out = pl.pallas_call(
        functools.partial(_tebn2d_kernel, eps=float(eps), inv_n=1.0 / float(B * S)),
        out_shape=jax.ShapeDtypeStruct((T, B, C, S), x.dtype),
        grid_spec=pltpu.PrefetchScalarGridSpec(
            num_scalar_prefetch=0,
            grid=grid,
            in_specs=[
                pl.BlockSpec((t_tile, B, c_tile, S), lambda tb, cb: (tb, 0, cb, 0)),
                pl.BlockSpec((t_tile, c_tile, 2), lambda tb, cb: (tb, cb, 0)),
            ],
            out_specs=pl.BlockSpec((t_tile, B, c_tile, S),
                                   lambda tb, cb: (tb, 0, cb, 0)),
        ),
        compiler_params=pltpu.CompilerParams(
            dimension_semantics=("parallel", "parallel"),
            vmem_limit_bytes=vmem_limit),
    )(x4, wb)

    return out.reshape(T, B, C, H, W)


def tebn2d_reference(x, weight, bias, scale, *, eps=1e-5):
    """Pure-JAX reference mirroring the PyTorch training-mode loop (f32 math)."""
    x = x.astype(jnp.float32)
    T = x.shape[0]
    outs = []
    for t in range(T):
        xt = x[t]
        mean = jnp.mean(xt, axis=(0, 2, 3), keepdims=True)
        var = jnp.var(xt, axis=(0, 2, 3), keepdims=True)      # unbiased=False
        y = (xt - mean) / jnp.sqrt(var + eps)
        y = y * weight[None, :, None, None] + bias[None, :, None, None]
        outs.append(y * scale[t])
    return jnp.stack(outs, axis=0)


if __name__ == "__main__":
    # config analogous to the PyTorch module's __init__
    config = {"T": 8, "binarize_norm": False}
    T = config["T"]
    B, C, H, W = 2, 4, 16, 16

    key = jax.random.PRNGKey(0)
    kx, kw, kb, ks = jax.random.split(key, 4)
    x = jax.random.normal(kx, (T, B, C, H, W), dtype=jnp.float32)
    # CustomBatchNorm2d affine params (torch init: weight=1, bias=0) and the TEBN
    # per-timestep scale (init: 1); perturbed so the test exercises them.
    weight = 1.0 + 0.1 * jax.random.normal(kw, (C,), dtype=jnp.float32)
    bias = 0.1 * jax.random.normal(kb, (C,), dtype=jnp.float32)
    scale = 1.0 + 0.1 * jax.random.normal(ks, (T,), dtype=jnp.float32)

    ref = tebn2d_reference(x, weight, bias, scale, eps=1e-5)

    # f32 path (exact semantics of the original module).
    out = tebn2d_forward(x, weight, bias, scale, eps=1e-5)
    out = jax.block_until_ready(out)
    assert out.shape == x.shape and out.dtype == jnp.float32
    np.testing.assert_allclose(np.asarray(out), np.asarray(ref), rtol=2e-4, atol=2e-4)

    # bf16 streaming path (native-dtype I/O; stats still computed in f32).
    out_bf = tebn2d_forward(x.astype(jnp.bfloat16), weight, bias, scale, eps=1e-5)
    out_bf = jax.block_until_ready(out_bf)
    assert out_bf.shape == x.shape and out_bf.dtype == jnp.bfloat16
    np.testing.assert_allclose(np.asarray(out_bf, dtype=np.float32), np.asarray(ref),
                               rtol=0.1, atol=0.1)

    print("KERNEL_OK")
</pallas_src>

<mosaic_0001>
module attributes {stable_mosaic.version = 11 : i64} {
  func.func @_tebn2d_kernel(%arg0: i32, %arg1: i32, %arg2: memref<4x2x4x256xf32, #tpu.memory_space<vmem>>, %arg3: memref<4x4x2xf32, #tpu.memory_space<vmem>>, %arg4: memref<4x2x4x256xf32, #tpu.memory_space<vmem>>) attributes {dimension_semantics = [#tpu.dimension_semantics<parallel>, #tpu.dimension_semantics<parallel>], iteration_bounds = array<i64: 2, 1>, scalar_prefetch = 0 : i64, scratch_operands = 0 : i64, tpu.core_type = #tpu.core_type<tc>, window_params = [{transform_indices = @transform_0, window_bounds = array<i64: 4, 2, 4, 256>}, {transform_indices = @transform_1, window_bounds = array<i64: 4, 4, 2>}, {transform_indices = @transform_2, window_bounds = array<i64: 4, 2, 4, 256>}]} {
    %c0 = arith.constant 0 : index
    %c0_0 = arith.constant 0 : index
    %c0_1 = arith.constant 0 : index
    %c0_2 = arith.constant 0 : index
    %0 = vector.load %arg2[%c0, %c0_0, %c0_1, %c0_2] : memref<4x2x4x256xf32, #tpu.memory_space<vmem>>, vector<4x2x4x256xf32>
    %cst = arith.constant dense<0.000000e+00> : vector<4x4xf32>
    %1 = vector.multi_reduction <add>, %0, %cst [1, 3] : vector<4x2x4x256xf32> to vector<4x4xf32>
    %2 = vector.shape_cast %1 : vector<4x4xf32> to vector<4x1x4x1xf32>
    %3 = arith.mulf %0, %0 : vector<4x2x4x256xf32>
    %cst_3 = arith.constant dense<0.000000e+00> : vector<4x4xf32>
    %4 = vector.multi_reduction <add>, %3, %cst_3 [1, 3] : vector<4x2x4x256xf32> to vector<4x4xf32>
    %5 = vector.shape_cast %4 : vector<4x4xf32> to vector<4x1x4x1xf32>
    %cst_4 = arith.constant 0.001953125 : f32
    %6 = vector.broadcast %cst_4 : f32 to vector<4x1x4x1xf32>
    %7 = arith.mulf %2, %6 : vector<4x1x4x1xf32>
    %cst_5 = arith.constant 0.001953125 : f32
    %8 = vector.broadcast %cst_5 : f32 to vector<4x1x4x1xf32>
    %9 = arith.mulf %5, %8 : vector<4x1x4x1xf32>
    %10 = arith.mulf %7, %7 : vector<4x1x4x1xf32>
    %11 = arith.subf %9, %10 : vector<4x1x4x1xf32>
    %cst_6 = arith.constant 0.000000e+00 : f32
    %12 = vector.broadcast %cst_6 : f32 to vector<4x1x4x1xf32>
    %13 = arith.maximumf %11, %12 : vector<4x1x4x1xf32>
    %cst_7 = arith.constant 9.99999974E-6 : f32
    %14 = vector.broadcast %cst_7 : f32 to vector<4x1x4x1xf32>
    %15 = arith.addf %13, %14 : vector<4x1x4x1xf32>
    %16 = math.rsqrt %15 : vector<4x1x4x1xf32>
    %c0_8 = arith.constant 0 : index
    %c0_9 = arith.constant 0 : index
    %c0_10 = arith.constant 0 : index
    %17 = vector.load %arg3[%c0_8, %c0_9, %c0_10] : memref<4x4x2xf32, #tpu.memory_space<vmem>>, vector<4x4x2xf32>
    %18 = vector.extract_strided_slice %17 {offsets = [0, 0, 0], sizes = [4, 4, 1], strides = [1, 1, 1]} : vector<4x4x2xf32> to vector<4x4x1xf32>
    %19 = vector.shape_cast %18 : vector<4x4x1xf32> to vector<4x1x4x1xf32>
    %20 = vector.extract_strided_slice %17 {offsets = [0, 0, 1], sizes = [4, 4, 1], strides = [1, 1, 1]} : vector<4x4x2xf32> to vector<4x4x1xf32>
    %21 = vector.shape_cast %20 : vector<4x4x1xf32> to vector<4x1x4x1xf32>
    %22 = arith.mulf %16, %19 : vector<4x1x4x1xf32>
    %23 = vector.broadcast %22 : vector<4x1x4x1xf32> to vector<4x2x4x256xf32>
    %24 = arith.mulf %0, %23 : vector<4x2x4x256xf32>
    %25 = arith.mulf %7, %22 : vector<4x1x4x1xf32>
    %26 = arith.subf %21, %25 : vector<4x1x4x1xf32>
    %27 = vector.broadcast %26 : vector<4x1x4x1xf32> to vector<4x2x4x256xf32>
    %28 = arith.addf %24, %27 : vector<4x2x4x256xf32>
    %c0_11 = arith.constant 0 : index
    %c0_12 = arith.constant 0 : index
    %c0_13 = arith.constant 0 : index
    %c0_14 = arith.constant 0 : index
    %29 = vector.load %arg4[%c0_11, %c0_12, %c0_13, %c0_14] : memref<4x2x4x256xf32, #tpu.memory_space<vmem>>, vector<4x2x4x256xf32>
    tpu.vector_store %arg4[%c0_11, %c0_12, %c0_13, %c0_14], %28 {strides = array<i32>} : memref<4x2x4x256xf32, #tpu.memory_space<vmem>>, vector<4x2x4x256xf32>,
    return
  }
  func.func @transform_0(%arg0: i32, %arg1: i32) -> (i32, i32, i32, i32) {
    %c0_i32 = arith.constant 0 : i32
    %c0_i32_0 = arith.constant 0 : i32
    %c0_i32_1 = arith.constant 0 : i32
    return %arg0, %c0_i32, %arg1, %c0_i32_0 : i32, i32, i32, i32
  }
  func.func @transform_1(%arg0: i32, %arg1: i32) -> (i32, i32, i32) {
    %c0_i32 = arith.constant 0 : i32
    %c0_i32_0 = arith.constant 0 : i32
    return %arg0, %arg1, %c0_i32 : i32, i32, i32
  }
  func.func @transform_2(%arg0: i32, %arg1: i32) -> (i32, i32, i32, i32) {
    %c0_i32 = arith.constant 0 : i32
    %c0_i32_0 = arith.constant 0 : i32
    %c0_i32_1 = arith.constant 0 : i32
    return %arg0, %c0_i32, %arg1, %c0_i32_0 : i32, i32, i32, i32
  }
}

</mosaic_0001>

<bundles_post_ra>
// kernel: tpu_custom_call.1
= control target key start
LH: loop header
LB: loop body
LE: loop exit
PB: predicated region body
PF: predicated region fallthrough
CT: control target
= control target key end

     0   :  { %7 = vsyncpa [#allocation3], 0  ;;  %s1211_s0 = inlined_call_operand.hbm [shape: f32[8,2,4,256], index: 0, kind: input, shape index: {}]   ;;  %s1212_s1 = inlined_call_operand.vmem [shape: f32[8,4,2], index: 1, kind: input, shape index: {}]   ;;  %s1213_s2 = inlined_call_operand.hbm [shape: f32[8,2,4,256], index: 2, kind: output, shape index: {}]  }
   0x1   :  { %9 = vsyncpa [#allocation3 + $0x1], 0 }
   0x2   :  { %10 = vsyncpa [#allocation4], 0 }
   0x3   :  { %12 = vsyncpa [#allocation4 + $0x1], 0  ;;  %s966_s9 = smov 0   ;;  %s968_s10 = smov 0  }
   0x4   :  { %s970_s11 = smov 0   ;;  %s972_s12 = smov 0  }
   0x5   :  { %s974_s13 = smov 0   ;;  %s976_s14 = smov 0  }
   0x6 LB: > { %s722_s15 = sadd.s32 4294967295, %s941_s14   ;;  %s723_s16 = sadd.s32 4294967294, %s941_s14   ;;  %s941_s14 = sphi %s976_s14, %s18_s14   ;;  %s937_s13 = sphi %s974_s13, %s1222_s13   ;;  %s933_s12 = sphi %s972_s12, %s1221_s12   ;;  %s929_s11 = sphi %s970_s11, %s1220_s11   ;;  %s925_s10 = sphi %s968_s10, %s1219_s10   ;;  %s921_s9 = sphi %s966_s9, %s1218_s9  }
   0x7   : > { %s30_s17 = sadd.s32 1, %s937_s13  ;;  %s39_s18 = sadd.s32 1, %s929_s11 }
   0x8   : > { %p32_p0 = scmp.ge.s32.totalorder %s30_s17, 2  ;;  %p46_p1 = scmp.ne.s32.totalorder %s929_s11, %s925_s10 }
   0x9   : > { %p47_p2 = scmp.eq.s32.totalorder %s941_s14, 0  ;;  %p52_p3 = scmp.ne.s32.totalorder %s925_s10, %s921_s9 }
   0xa   : > { %s1224_s17 = smov (%p32_p0, %s30_s17), 0  ;;  %p53_p5 = scmp.eq.s32.totalorder %s722_s15, 0 }
   0xb   : > { %p1007_p4 = por %p47_p2, %p46_p1  ;;  %s34_s20 = ssub.s32 %s937_s13, %s1224_s17 }
   0xc   : > { %p106_p6 = scmp.eq.s32.totalorder %s722_s15, 1  ;;  %p37_p7 = scmp.eq.s32.totalorder %s34_s20, 0 }
   0xd   : > { %p1013_p8 = por %p53_p5, %p52_p3  ;;  %p112_p10 = scmp.eq.s32.totalorder %s723_s16, 1 }
   0xe   : > { %p1017_p9 = por %p106_p6, %p46_p1  ;;  %p725_p12 = scmp.ge.s32.totalorder %s941_s14, 2 }
   0xf   : > { %s1022_s23 = scalar_select %p37_p7, %s929_s11, %s39_s18  }
  0x10   : > { %p1024_p11 = por %p112_p10, %p52_p3  ;;  %p757_p13 = scmp.lt.s32.totalorder %s941_s14, 2 }
  0x11   : > { %s132_s25 = sand.u32 1, %s929_s11   ;;  %s742_s27 = sshll.u32 %s937_s13, 6 }
  0x12   : > { %s726_s26 = sshll.u32 %s132_s25, 6  ;;  %s144_s30 = scalar_lea.hbm %s1211_s0, %s742_s27 }
  0x13   : > { %s136_s3 = scalar_lea.vmem [#allocation2], %s726_s26  ;;  %s145_s5 = sshll.u32 %s144_s30, 4  ;;  %s146_s5 = int_to_ptr.hbm [resolvable:$true] %s145_s5 }
  0x14   : > { %s147_s4 = sshll.u32 %s136_s3, 4  ;;  %p750_p0 = pnand %p757_p13, %p1007_p4  ;;  %s148_s4 = int_to_ptr.vmem [resolvable:$true] %s147_s4 }
  0x15   : > { %p730_p1 = scmp.ge.s32.totalorder %s941_s14, 1  ;;  %s133_s6 = scalar_lea.sflag [#allocation3], %s132_s25 }
  0x16   : > { %s943_s7 = smov 128   ;;  %s944_s8 = smov 8  }
  0x17   : > { %752 = dma.hbm_to_vmem [thread:$0]  (!%p750_p0), %s146_s5, 1024, %s148_s4, %s133_s6, %s943_s7, %s943_s7, %s944_s8  }
  0x18   : > { %p167_p2 = scmp.lt.s32.totalorder %s941_s14, 3 }
  0x1a   : > { %p168_p3 = pnand %p730_p1, %p167_p2 }
  0x1b   : > { %s1040_s15 = sand.u32 (!%p168_p3), 1, %s925_s10  }
  0x1c   : > { %171 = sbr.rel (%p168_p3) target bundleno = 464 (0x1d0), region = 28  ;;  %s731_s16 = sshll.u32 (!%p168_p3), %s1040_s15, 6 }
  0x1d   : > { %s174_s18 = scalar_lea.sflag (!%p168_p3), [#allocation3], %s1040_s15  ;;  %s177_s19 = scalar_lea.vmem (!%p168_p3), [#allocation2], %s731_s16 }
  0x21   : > { %912 = dma.done.wait (%p1013_p8), %s174_s18, 1024  }
  0x22   : > { %914 = vsyncadd (%p1013_p8), %s174_s18, 4294966272  ;;  %v1050_v0 = vld [vmem:[%s177_s19] sm:$0xff]  ;;  %v1052_v1 = vld [vmem:[%s177_s19 + $0x8] sm:$0xff]  ;;  %vm277_vm0 = vcmask 1043456   ;;  %s733_s20 = sshll.u32 %s933_s12, 2  ;;  %s946_s28 = smov 1  }
  0x23   : > { %234 = vst [vmem:[#allocation1] ss:$2 sm:$0xff] %v1050_v0  ;;  %v1055_v2 = vld [vmem:[%s177_s19 + $0x10] sm:$0xff]  ;;  %v1057_v3 = vld [vmem:[%s177_s19 + $0x18] sm:$0xff]  ;;  %v1062_v4 = vld [vmem:[%s177_s19 + $0x20] sm:$0xff]  ;;  %v314_v26 = vmul.f32 %v1050_v0, %v1050_v0  ;;  %v315_v28 = vmul.f32 %v1052_v1, %v1052_v1  ;;  %p209_p4 = scmp.lt.s32.totalorder %s733_s20, 7 }
  0x24   : > { %238 = vst [vmem:[#allocation1 + $0x10] ss:$2 sm:$0xff] %v1052_v1  ;;  %v1064_v5 = vld [vmem:[%s177_s19 + $0x28] sm:$0xff]  ;;  %v1066_v8 = vld [vmem:[%s177_s19 + $0x30] sm:$0xff]  ;;  %v1072_v14 = vld [vmem:[%s177_s19 + $0x38] sm:$0xff]  ;;  %v316_v38 = vmul.f32 %v1055_v2, %v1055_v2  ;;  %v317_v41 = vmul.f32 %v1057_v3, %v1057_v3  ;;  %v318_v54 = vmul.f32 %v1062_v4, %v1062_v4  ;;  %s1156_s29 = scalar_lea.vmem [#allocation5], %s731_s16 }
  0x25   : > { %242 = vst [vmem:[#allocation1 + $0x20] ss:$2 sm:$0xff] %v1055_v2  ;;  %v319_v52 = vmul.f32 %v1064_v5, %v1064_v5  ;;  %v320_v61 = vmul.f32 %v1066_v8, %v1066_v8  ;;  %s1226_s20 = smov (!%p209_p4, %s733_s20), 7  ;;  %s744_s30 = sshll.u32 %s933_s12, 6 }
  0x26   : > { %246 = vst [vmem:[#allocation1 + $0x30] ss:$2 sm:$0xff] %v1057_v3  ;;  %s734_s21 = sshll.u32 %s1226_s20, 2  ;;  %s616_s5 = scalar_lea.hbm %s1213_s2, %s744_s30 }
  0x27   : > { %s1142_s27 = scalar_lea.vmem %s1212_s1, %s734_s21  ;;  %s617_s6 = sshll.u32 %s1156_s29, 4  ;;  %s618_s6 = int_to_ptr.vmem [resolvable:$true] %s617_s6 }
  0x28   : > { %s619_s7 = sshll.u32 %s616_s5, 4  ;;  %s602_s12 = scalar_lea.sflag [#allocation4], %s1040_s15  ;;  %s620_s7 = int_to_ptr.hbm [resolvable:$true] %s619_s7 }
  0x29   : > { %s873_s8 = sshra.s32 %s620_s7, 4  ;;  %s879_s20 = scalar_lea.hbm %s1213_s2, 128  ;;  %s874_s8 = int_to_ptr.hbm [resolvable:$true] %s873_s8 }
  0x2a   : > { %v235_v6 = vld.sshfl [vmem:[#allocation1] sm:$0xff pattern:$0x75316420]  ;;  %v236_v7 = vld.sshfl [vmem:[#allocation1 + $0x8] sm:$0xff pattern:$0x75316420]  ;;  %p880_p8 = scmp.lt.s32.totalorder %s874_s8, %s1213_s2 }
  0x2b   : > { %v239_v9 = vld.sshfl [vmem:[#allocation1 + $0x10] sm:$0xff pattern:$0x75316420]  ;;  %v240_v10 = vld.sshfl [vmem:[#allocation1 + $0x18] sm:$0xff pattern:$0x75316420] }
  0x2c   : > { %252 = vst [vmem:[#allocation1 + $0x10] ss:$2 sm:$0xff] %v1064_v5  ;;  %v278_v11 = vsel %vm277_vm0, %v235_v6, 0.0  ;;  %v279_v12 = vsel %vm277_vm0, %v236_v7, 0.0  ;;  %v281_v13 = vsel %vm277_vm0, %v239_v9, 0.0  ;;  %v283_v16 = vsel %vm277_vm0, %v240_v10, 0.0 }
  0x2d   : > { %v280_v15 = vadd.f32 %v279_v12, %v278_v11  ;;  %249 = vst [vmem:[#allocation1] ss:$2 sm:$0xff] %v1062_v4  ;;  %v243_v17 = vld.sshfl [vmem:[#allocation1 + $0x20] sm:$0xff pattern:$0x75316420]  ;;  %v321_v7 = vmul.f32 %v1072_v14, %v1072_v14  ;;  %s875_s16 = scalar_lea.hbm %s874_s8, 64 }
  0x2e   : > { %v244_v18 = vld.sshfl [vmem:[#allocation1 + $0x28] sm:$0xff pattern:$0x75316420]  ;;  %v247_v19 = vld.sshfl [vmem:[#allocation1 + $0x30] sm:$0xff pattern:$0x75316420]  ;;  %p876_p5 = scmp.ne.s32.totalorder %s874_s8, %s875_s16  ;;  %p881_p10 = scmp.lt.s32.totalorder %s879_s20, %s875_s16 }
  0x2f   : > { %v282_v20 = vadd.f32 %v281_v13, %v280_v15  ;;  %v248_v21 = vld.sshfl [vmem:[#allocation1 + $0x38] sm:$0xff pattern:$0x75316420]  ;;  %255 = vst [vmem:[#allocation1 + $0x20] ss:$2 sm:$0xff] %v1066_v8  ;;  %v287_v22 = vsel %vm277_vm0, %v243_v17, 0.0 }
  0x30   : > { %258 = vst [vmem:[#allocation1 + $0x30] ss:$2 sm:$0xff] %v1072_v14  ;;  %v288_v23 = vsel %vm277_vm0, %v244_v18, 0.0  ;;  %v290_v24 = vsel %vm277_vm0, %v247_v19, 0.0  ;;  %v292_v29 = vsel %vm277_vm0, %v248_v21, 0.0  ;;  %p877_p6 = pnand %p876_p5, %p1017_p9  ;;  %p882_p13 = por %p881_p10, %p880_p8 }
  0x31   : > { %v284_v25 = vadd.f32 %v283_v16, %v282_v20  ;;  %v289_v27 = vadd.f32 %v288_v23, %v287_v22 }
  0x32   : > { %p878_p7 = pneg %p877_p6 }
  0x33   : > { %285 = vadd.xlane.f32.xlu0 %v284_v25  ;;  %v253_v30 = vld.sshfl [vmem:[#allocation1 + $0x10] sm:$0xff pattern:$0x75316420]  ;;  %v254_v31 = vld.sshfl [vmem:[#allocation1 + $0x18] sm:$0xff pattern:$0x75316420]  ;;  %v291_v32 = vadd.f32 %v290_v24, %v289_v27 }
  0x34   : > { %v250_v33 = vld.sshfl [vmem:[#allocation1] sm:$0xff pattern:$0x75316420]  ;;  %v251_v34 = vld.sshfl [vmem:[#allocation1 + $0x8] sm:$0xff pattern:$0x75316420]  ;;  %p883_p0 = pnand %p882_p13, %p878_p7 }
  0x35   : > { %v296_v35 = vsel %vm277_vm0, %v250_v33, 0.0  ;;  %v297_v36 = vsel %vm277_vm0, %v251_v34, 0.0  ;;  %v299_v37 = vsel %vm277_vm0, %v253_v30, 0.0  ;;  %330 = vst [vmem:[#allocation1] ss:$2 sm:$0xff] %v314_v26  ;;  %v301_v40 = vsel %vm277_vm0, %v254_v31, 0.0 }
  0x36   : > { %v298_v39 = vadd.f32 %v297_v36, %v296_v35  ;;  %334 = vst [vmem:[#allocation1 + $0x10] ss:$2 sm:$0xff] %v315_v28  ;;  %v256_v42 = vld.sshfl [vmem:[#allocation1 + $0x20] sm:$0xff pattern:$0x75316420]  ;;  %v293_v43 = vadd.f32 %v292_v29, %v291_v32 }
  0x37   : > { %v257_v44 = vld.sshfl [vmem:[#allocation1 + $0x28] sm:$0xff pattern:$0x75316420]  ;;  %v259_v45 = vld.sshfl [vmem:[#allocation1 + $0x30] sm:$0xff pattern:$0x75316420] }
  0x38   : > { %v300_v46 = vadd.f32 %v299_v37, %v298_v39  ;;  %v260_v47 = vld.sshfl [vmem:[#allocation1 + $0x38] sm:$0xff pattern:$0x75316420]  ;;  %v305_v48 = vsel %vm277_vm0, %v256_v42, 0.0  ;;  %v306_v49 = vsel %vm277_vm0, %v257_v44, 0.0  ;;  %v308_v51 = vsel %vm277_vm0, %v259_v45, 0.0 }
  0x39   : > { %v307_v50 = vadd.f32 %v306_v49, %v305_v48  ;;  %338 = vst [vmem:[#allocation1 + $0x20] ss:$2 sm:$0xff] %v316_v38  ;;  %v310_v55 = vsel %vm277_vm0, %v260_v47, 0.0 }
  0x3a   : > { %v302_v53 = vadd.f32 %v301_v40, %v300_v46  ;;  %342 = vst [vmem:[#allocation1 + $0x30] ss:$2 sm:$0xff] %v317_v41 }
  0x3b   : > { %294 = vadd.xlane.f32.xlu0 %v293_v43  ;;  %v309_v58 = vadd.f32 %v308_v51, %v307_v50 }
  0x3c   : > { %303 = vadd.xlane.f32.xlu1 %v302_v53  ;;  %v331_v56 = vld.sshfl [vmem:[#allocation1] sm:$0xff pattern:$0x75316420]  ;;  %v332_v57 = vld.sshfl [vmem:[#allocation1 + $0x8] sm:$0xff pattern:$0x75316420] }
  0x3d   : > { %v335_v59 = vld.sshfl [vmem:[#allocation1 + $0x10] sm:$0xff pattern:$0x75316420]  ;;  %v336_v60 = vld.sshfl [vmem:[#allocation1 + $0x18] sm:$0xff pattern:$0x75316420]  ;;  %v311_v11 = vadd.f32 %v310_v55, %v309_v58 }
  0x3e   : > { %348 = vst [vmem:[#allocation1 + $0x10] ss:$2 sm:$0xff] %v319_v52  ;;  %v373_v62 = vsel %vm277_vm0, %v331_v56, 0.0  ;;  %v374_v63 = vsel %vm277_vm0, %v332_v57, 0.0  ;;  %v376_v6 = vsel %vm277_vm0, %v335_v59, 0.0  ;;  %v378_v10 = vsel %vm277_vm0, %v336_v60, 0.0 }
  0x3f   : > { %v375_v9 = vadd.f32 %v374_v63, %v373_v62  ;;  %345 = vst [vmem:[#allocation1] ss:$2 sm:$0xff] %v318_v54 }
  0x40   : > { %v339_v12 = vld.sshfl [vmem:[#allocation1 + $0x20] sm:$0xff pattern:$0x75316420]  ;;  %v340_v13 = vld.sshfl [vmem:[#allocation1 + $0x28] sm:$0xff pattern:$0x75316420] }
  0x41   : > { %v377_v15 = vadd.f32 %v376_v6, %v375_v9  ;;  %v343_v16 = vld.sshfl [vmem:[#allocation1 + $0x30] sm:$0xff pattern:$0x75316420]  ;;  %v344_v17 = vld.sshfl [vmem:[#allocation1 + $0x38] sm:$0xff pattern:$0x75316420] }
  0x42   : > { %351 = vst [vmem:[#allocation1 + $0x20] ss:$2 sm:$0xff] %v320_v61  ;;  %v382_v18 = vsel %vm277_vm0, %v339_v12, 0.0  ;;  %v383_v19 = vsel %vm277_vm0, %v340_v13, 0.0  ;;  %v385_v20 = vsel %vm277_vm0, %v343_v16, 0.0  ;;  %v387_v23 = vsel %vm277_vm0, %v344_v17, 0.0 }
  0x43   : > { %v379_v21 = vadd.f32 %v378_v10, %v377_v15  ;;  %354 = vst [vmem:[#allocation1 + $0x30] ss:$2 sm:$0xff] %v321_v7  ;;  %v384_v22 = vadd.f32 %v383_v19, %v382_v18  ;;  %v945_v17 = vmov 0  }
  0x44   : > { %312 = vadd.xlane.f32.xlu1 %v311_v11  ;;  %816 = vset.pattern.permute.xlu2 %v945_v17 }
  0x45   : > { %380 = vadd.xlane.f32.xlu2 %v379_v21  ;;  %v386_v24 = vadd.f32 %v385_v20, %v384_v22  ;;  %v349_v25 = vld.sshfl [vmem:[#allocation1 + $0x10] sm:$0xff pattern:$0x75316420]  ;;  %v350_v26 = vld.sshfl [vmem:[#allocation1 + $0x18] sm:$0xff pattern:$0x75316420]  ;;  %817 = vset.pattern.permute.xlu1 %v945_v17 }
  0x46   : > { %v346_v27 = vld.sshfl [vmem:[#allocation1] sm:$0xff pattern:$0x75316420]  ;;  %v347_v28 = vld.sshfl [vmem:[#allocation1 + $0x8] sm:$0xff pattern:$0x75316420]  ;;  %815 = vset.pattern.permute.xlu0 %v945_v17 }
  0x47   : > { %v391_v29 = vsel %vm277_vm0, %v346_v27, 0.0  ;;  %v392_v30 = vsel %vm277_vm0, %v347_v28, 0.0  ;;  %v394_v31 = vsel %vm277_vm0, %v349_v25, 0.0  ;;  %v396_v33 = vsel %vm277_vm0, %v350_v26, 0.0 }
  0x48   : > { %v393_v32 = vadd.f32 %v392_v30, %v391_v29  ;;  %v388_v34 = vadd.f32 %v387_v23, %v386_v24 }
  0x49   : > { %v352_v35 = vld.sshfl [vmem:[#allocation1 + $0x20] sm:$0xff pattern:$0x75316420]  ;;  %v353_v36 = vld.sshfl [vmem:[#allocation1 + $0x28] sm:$0xff pattern:$0x75316420] }
  0x4a   : > { %v395_v37 = vadd.f32 %v394_v31, %v393_v32  ;;  %v355_v38 = vld.sshfl [vmem:[#allocation1 + $0x30] sm:$0xff pattern:$0x75316420]  ;;  %v356_v39 = vld.sshfl [vmem:[#allocation1 + $0x38] sm:$0xff pattern:$0x75316420] }
  0x4b   : > { %v400_v40 = vsel %vm277_vm0, %v352_v35, 0.0  ;;  %v401_v41 = vsel %vm277_vm0, %v353_v36, 0.0  ;;  %v403_v42 = vsel %vm277_vm0, %v355_v38, 0.0  ;;  %v405_v45 = vsel %vm277_vm0, %v356_v39, 0.0 }
  0x4c   : > { %v397_v43 = vadd.f32 %v396_v33, %v395_v37  ;;  %v402_v44 = vadd.f32 %v401_v41, %v400_v40 }
  0x4d   : > { %389 = vadd.xlane.f32.xlu2 %v388_v34  ;;  %v473_v34 = vld [vmem:[%s1142_s27] sm:$0xf] }
  0x4e   : > { %398 = vadd.xlane.f32.xlu0 %v397_v43  ;;  %v404_v46 = vadd.f32 %v403_v42, %v402_v44 }
  0x50   : > { %v406_v47 = vadd.f32 %v405_v45, %v404_v46 }
  0x52   : > { %407 = vadd.xlane.f32.xlu1 %v406_v47 }
  0xa6   : > { %v286_v48 = vpop.xlane.xlu0 %285 }
  0xa7   : > { %v1122_v50 = vmul.f32 0.001953125, %v286_v48 }
  0xa9   : > { %v417_v51 = vmul.f32 %v1122_v50, %v1122_v50 }
  0xae   : > { %v295_v52 = vpop.xlane.xlu0 %294 }
  0xaf   : > { %v304_v49 = vpop.xlane.xlu1 %303  ;;  %v1126_v55 = vmul.f32 0.001953125, %v295_v52 }
  0xb0   : > { %v1128_v58 = vmul.f32 0.001953125, %v304_v49  ;;  %v474_v49 = vld [vmem:[%s1142_s27 + $0x4] sm:$0xf] }
  0xb1   : > { %v418_v60 = vmul.f32 %v1126_v55, %v1126_v55 }
  0xb2   : > { %v419_v62 = vmul.f32 %v1128_v58, %v1128_v58 }
  0xb7   : > { %v313_v57 = vpop.xlane.xlu1 %312 }
  0xb8   : > { %v381_v53 = vpop.xlane.xlu2 %380  ;;  %v1135_v63 = vmul.f32 0.001953125, %v313_v57 }
  0xb9   : > { %v413_v54 = vmul.f32 0.001953125, %v381_v53  ;;  %v475_v53 = vld [vmem:[%s1142_s27 + $0x8] sm:$0xf] }
  0xba   : > { %v420_v12 = vmul.f32 %v1135_v63, %v1135_v63 }
  0xbb   : > { %v421_v56 = vsub.f32 %v413_v54, %v417_v51 }
  0xbd   : > { %v425_v59 = vmax.f32 %v421_v56, 0.0 }
  0xbf   : > { %v429_v61 = vadd.f32 1e-05, %v425_v59 }
  0xc0   : > { %v390_v6 = vpop.xlane.xlu2 %389 }
  0xc1   : > { %821 = vrsqrt.f32 %v429_v61  ;;  %v414_v7 = vmul.f32 0.001953125, %v390_v6  ;;  %v399_v9 = vpop.xlane.xlu0 %398  ;;  %vm439_vm2 = vweird.f32 %v429_v61 }
  0xc2   : > { %v415_v10 = vmul.f32 0.001953125, %v399_v9 }
  0xc3   : > { %v422_v11 = vsub.f32 %v414_v7, %v418_v60 }
  0xc4   : > { %v423_v13 = vsub.f32 %v415_v10, %v419_v62  ;;  %v476_v62 = vld [vmem:[%s1142_s27 + $0xc] sm:$0xf] }
  0xc5   : > { %v426_v15 = vmax.f32 %v422_v11, 0.0  ;;  %v408_v16 = vpop.xlane.xlu1 %407  ;;  %v947_v11 = vmov 1  }
  0xc6   : > { %v427_v18 = vmax.f32 %v423_v13, 0.0  ;;  %v416_v19 = vmul.f32 0.001953125, %v408_v16 }
  0xc7   : > { %v822_v20 = vpop.eup %821  ;;  %v430_v21 = vadd.f32 1e-05, %v426_v15 }
  0xc8   : > { %v434_v22 = vmul.f32 %v822_v20, %v429_v61  ;;  %v431_v23 = vadd.f32 1e-05, %v427_v18  ;;  %v424_v24 = vsub.f32 %v416_v19, %v420_v12  ;;  %vm440_vm1 = vweird.f32 %v822_v20 }
  0xc9   : > { %823 = vrsqrt.f32 %v430_v21  ;;  %vm441_vm3 = vmor %vm439_vm2, %vm440_vm1  ;;  %vm449_vm7 = vweird.f32 %v430_v21 }
  0xca   : > { %v435_v25 = vmul.f32 %v822_v20, %v434_v22  ;;  %825 = vrsqrt.f32 %v431_v23  ;;  %v428_v26 = vmax.f32 %v424_v24, 0.0  ;;  %vm459_vm5 = vweird.f32 %v431_v23 }
  0xcc   : > { %v436_v27 = vmul.f32 0.5, %v435_v25  ;;  %v432_v28 = vadd.f32 1e-05, %v428_v26 }
  0xce   : > { %v437_v29 = vsub.f32 1.5, %v436_v27  ;;  %827 = vrsqrt.f32 %v432_v28  ;;  %vm469_vm9 = vweird.f32 %v432_v28 }
  0xcf   : > { %v824_v30 = vpop.eup %823 }
  0xd0   : > { %v826_v31 = vpop.eup %825  ;;  %v444_v32 = vmul.f32 %v824_v30, %v430_v21  ;;  %v438_v33 = vmul.f32 %v822_v20, %v437_v29  ;;  %vm450_vm4 = vweird.f32 %v824_v30 }
  0xd1   : > { %v454_v35 = vmul.f32 %v826_v31, %v431_v23  ;;  %vm460_vm6 = vweird.f32 %v826_v31  ;;  %vm451_vm8 = vmor %vm449_vm7, %vm450_vm4 }
  0xd2   : > { %v445_v36 = vmul.f32 %v824_v30, %v444_v32  ;;  %v442_v37 = vsel %vm441_vm3, %v822_v20, %v438_v33  ;;  %vm461_vm11 = vmor %vm459_vm5, %vm460_vm6 }
  0xd3   : > { %v455_v38 = vmul.f32 %v826_v31, %v454_v35  ;;  %v477_v39 = vmul.f32 %v473_v34, %v442_v37 }
  0xd4   : > { %v828_v40 = vpop.eup %827  ;;  %v446_v41 = vmul.f32 0.5, %v445_v36 }
  0xd5   : > { %v456_v42 = vmul.f32 0.5, %v455_v38  ;;  %v464_v43 = vmul.f32 %v828_v40, %v432_v28  ;;  %v525_v44 = vmul.f32 %v477_v39, %v1122_v50  ;;  %vm470_vm10 = vweird.f32 %v828_v40 }
  0xd6   : > { %v447_v45 = vsub.f32 1.5, %v446_v41  ;;  %vm471_vm12 = vmor %vm469_vm9, %vm470_vm10 }
  0xd7   : > { %v457_v46 = vsub.f32 1.5, %v456_v42  ;;  %v465_v47 = vmul.f32 %v828_v40, %v464_v43  ;;  %533 = vrot.lane.b32.xlu2 %v525_v44, %s946_s28 }
  0xd8   : > { %v448_v48 = vmul.f32 %v824_v30, %v447_v45 }
  0xd9   : > { %v466_v51 = vmul.f32 0.5, %v465_v47  ;;  %v458_v52 = vmul.f32 %v826_v31, %v457_v46 }
  0xda   : > { %v452_v50 = vsel %vm451_vm8, %v824_v30, %v448_v48 }
  0xdb   : > { %v467_v54 = vsub.f32 1.5, %v466_v51  ;;  %v478_v56 = vmul.f32 %v474_v49, %v452_v50  ;;  %v462_v57 = vsel %vm461_vm11, %v826_v31, %v458_v52 }
  0xdc   : > { %v479_v59 = vmul.f32 %v475_v53, %v462_v57 }
  0xdd   : > { %v526_v60 = vmul.f32 %v478_v56, %v1126_v55  ;;  %v468_v61 = vmul.f32 %v828_v40, %v467_v54 }
  0xde   : > { %v527_v6 = vmul.f32 %v479_v59, %v1128_v58 }
  0xdf   : > { %535 = vrot.lane.b32.xlu0 %v526_v60, %s946_s28  ;;  %v472_v7 = vsel %vm471_vm12, %v828_v40, %v468_v61 }
  0xe0   : > { %537 = vrot.lane.b32.xlu1 %v527_v6, %s946_s28  ;;  %v480_v9 = vmul.f32 %v476_v62, %v472_v7 }
  0xe2   : > { %v528_v10 = vmul.f32 %v480_v9, %v1135_v63  ;;  %v948_v63 = vmov 839922192  }
  0xe3   : > { %v498_v19 = vunpack.c.l.s4 %v948_v63 }
  0xe4   : > { %539 = vrot.lane.b32.xlu2 %v528_v10, %s946_s28 }
  0xe5   : > { %v499_v23 = vunpack.c.0.s8 %v498_v19 }
  0xe7   : > { %483 = vperm.xlu0 %815, %v477_v39  }
  0xe8   : > { %491 = vperm.xlu1 %817, %v479_v59  }
  0xec   : > { %487 = vperm.xlu2 %816, %v478_v56  }
  0xef   : > { %819 = vset.pattern.permute.xlu0 %v947_v11 }
  0xf0   : > { %818 = vset.pattern.permute.xlu1 %v947_v11 }
  0xf4   : > { %495 = vperm.xlu2 %816, %v480_v9  }
  0xfc   : > { %820 = vset.pattern.permute.xlu2 %v947_v11 }
 0x131   : > { %v534_v55 = vpop.permute.xlu2 %533 }
 0x132   : > { %v545_v12 = vsub.f32 %v473_v34, %v534_v55 }
 0x134   : > { %551 = vperm.xlu1 %818, %v545_v12  }
 0x13e   : > { %v540_v13 = vpop.permute.xlu2 %539 }
 0x13f   : > { %v548_v58 = vsub.f32 %v476_v62, %v540_v13 }
 0x141   : > { %563 = vperm.xlu1 %818, %v548_v58  }
 0x146   : > { %v488_v20 = vpop.permute.xlu2 %487 }
 0x14e   : > { %v496_v26 = vpop.permute.xlu2 %495 }
 0x14f   : > { %v512_v34 = vperm.slane %v496_v26, %v499_v23 }
 0x151   : > { %v536_v15 = vpop.permute.xlu0 %535  ;;  %v523_v39 = vmul.f32 %v512_v34, %v1066_v8  ;;  %v524_v40 = vmul.f32 %v512_v34, %v1072_v14 }
 0x152   : > { %v546_v16 = vsub.f32 %v474_v49, %v536_v15  ;;  %v538_v17 = vpop.permute.xlu1 %537 }
 0x153   : > { %v547_v18 = vsub.f32 %v475_v53, %v538_v17 }
 0x154   : > { %555 = vperm.xlu0 %819, %v546_v16  }
 0x155   : > { %559 = vperm.xlu2 %820, %v547_v18  }
 0x159   : > { %v484_v22 = vpop.permute.xlu0 %483 }
 0x15a   : > { %v492_v21 = vpop.permute.xlu1 %491  ;;  %v500_v24 = vperm.slane %v484_v22, %v499_v23 }
 0x15b   : > { %v508_v32 = vperm.slane %v492_v21, %v499_v23 }
 0x15c   : > { %v517_v27 = vmul.f32 %v500_v24, %v1050_v0  ;;  %v518_v28 = vmul.f32 %v500_v24, %v1052_v1 }
 0x15d   : > { %v521_v0 = vmul.f32 %v508_v32, %v1062_v4  ;;  %v522_v1 = vmul.f32 %v508_v32, %v1064_v5  ;;  %v504_v4 = vperm.slane %v488_v20, %v499_v23 }
 0x15f   : > { %v519_v8 = vmul.f32 %v504_v4, %v1055_v2  ;;  %v520_v14 = vmul.f32 %v504_v4, %v1057_v3 }
 0x1a6   : > { %v552_v25 = vpop.permute.xlu1 %551 }
 0x1a7   : > { %v568_v29 = vperm.slane %v552_v25, %v499_v23 }
 0x1a9   : > { %v585_v30 = vadd.f32 %v568_v29, %v517_v27  ;;  %v586_v31 = vadd.f32 %v568_v29, %v518_v28 }
 0x1ab   : > { %593 = vst [vmem:[%s1156_s29] sm:$0xff] %v585_v30 }
 0x1ac   : > { %594 = vst [vmem:[%s1156_s29 + $0x8] sm:$0xff] %v586_v31 }
 0x1af   : > { %v560_v33 = vpop.permute.xlu2 %559 }
 0x1b0   : > { %v576_v35 = vperm.slane %v560_v33, %v499_v23 }
 0x1b2   : > { %v589_v36 = vadd.f32 %v576_v35, %v521_v0  ;;  %v590_v37 = vadd.f32 %v576_v35, %v522_v1 }
 0x1b3   : > { %v564_v38 = vpop.permute.xlu1 %563 }
 0x1b4   : > { %597 = vst [vmem:[%s1156_s29 + $0x20] sm:$0xff] %v589_v36  ;;  %v580_v41 = vperm.slane %v564_v38, %v499_v23 }
 0x1b5   : > { %598 = vst [vmem:[%s1156_s29 + $0x28] sm:$0xff] %v590_v37 }
 0x1b6   : > { %v591_v42 = vadd.f32 %v580_v41, %v523_v39  ;;  %v592_v43 = vadd.f32 %v580_v41, %v524_v40 }
 0x1b8   : > { %599 = vst [vmem:[%s1156_s29 + $0x30] sm:$0xff] %v591_v42 }
 0x1b9   : > { %600 = vst [vmem:[%s1156_s29 + $0x38] sm:$0xff] %v592_v43 }
 0x1c6   : > { %v556_v5 = vpop.permute.xlu0 %555 }
 0x1c7   : > { %v572_v44 = vperm.slane %v556_v5, %v499_v23 }
 0x1c9   : > { %v587_v45 = vadd.f32 %v572_v44, %v519_v8  ;;  %v588_v46 = vadd.f32 %v572_v44, %v520_v14 }
 0x1cb   : > { %595 = vst [vmem:[%s1156_s29 + $0x10] sm:$0xff] %v587_v45 }
 0x1cc   : > { %596 = vst [vmem:[%s1156_s29 + $0x18] sm:$0xff] %v588_v46 }
 0x1cd   : > { %886 = shalt.err (!%p883_p0)
}
 0x1ce   : > { %s949_s15 = smov 128   ;;  %s950_s26 = smov 8  }
 0x1cf   : > { %747 = dma.vmem_to_hbm [thread:$0]  (%p1017_p9), %s618_s6, 1024, %s620_s7, %s602_s12, %s949_s15, %s949_s15, %s950_s26  }
 0x1d0 PF: > { %s634_s27 = sand.u32 1, %s921_s9   ;;  %p754_p1 = pnand %p725_p12, %p1024_p11 }
 0x1d1   : > { %s635_s28 = scalar_lea.sflag [#allocation4], %s634_s27 }
 0x1d2   : > { %p755_p2 = pneg %p754_p1 }
 0x1d4   : > { %916 = dma.done.wait (%p755_p2), %s635_s28, 1024  }
 0x1d5   : > { %918 = vsyncadd (%p755_p2), %s635_s28, 4294966272  ;;  %s18_s14 = sadd.s32 1, %s941_s14   ;;  %s1218_s9 = smov %s925_s10 }
 0x1d6   : > { %p15_p3 = scmp.ge.s32.totalorder %s18_s14, 4   ;;  %s1219_s10 = smov %s929_s11 }
 0x1d7   : > { %s1220_s11 = smov %s1022_s23  ;;  %s1221_s12 = smov %s937_s13 }
 0x1d8   : > { %s1222_s13 = smov %s1224_s17  ;;  %17 = sbr.rel (!%p15_p3) target bundleno = 6 (0x6), region = 82 }
 0x1dd   :  { %641 = vsyncpa [#allocation3], 1 }
 0x1de   :  { %643 = vsyncpa [#allocation3 + $0x1], 1 }
 0x1df   :  { %644 = vsyncpa [#allocation4], 1 }
 0x1e0   :  { %646 = vsyncpa [#allocation4 + $0x1], 1 }

</bundles_post_ra>
